<compile_context>
chip_gen: v7x
topology: tpu7x:2x2x1
jax: 0.10.0
libtpu: 0.0.40
codegen_flags: <defaults>
</compile_context>

<pallas_src>
import functools

import jax
import jax.numpy as jnp
from jax.experimental import pallas as pl
from jax.experimental.pallas import tpu as pltpu


# ---------------------------------------------------------------------------
# Helpers
# ---------------------------------------------------------------------------
def _round_up(x, m):
    return ((x + m - 1) // m) * m


def _vmem_budget_bytes():
    """Generation-aware VMEM budget: ~75% of physical (≈96 MiB v5e/v6e, ≈48 MiB v7x)."""
    cap = None
    try:
        cap = getattr(pltpu.get_tpu_info(), "vmem_capacity_bytes", None)
    except Exception:
        cap = None
    if not cap:
        cap = 64 * 1024 * 1024  # conservative fallback (v7x-sized)
    return int(cap) * 3 // 4


# ---------------------------------------------------------------------------
# Fused fast path (tiny problems): everything resident, one grid-less kernel.
# ---------------------------------------------------------------------------
def _fused_small_kernel(x_ref, w1_ref, gamma_ref, beta_ref, w2_ref, o_ref, *, eps, inv_n):
    h = jnp.dot(x_ref[...], w1_ref[...], preferred_element_type=jnp.float32)
    mean = jnp.sum(h, axis=0, keepdims=True) * inv_n
    var = jnp.maximum(jnp.sum(h * h, axis=0, keepdims=True) * inv_n - mean * mean, 0.0)
    scale = gamma_ref[...] * jax.lax.rsqrt(var + eps)
    shift = beta_ref[...] - mean * scale
    a = jnp.maximum(h * scale + shift, 0.0)
    o_ref[...] = jnp.dot(a, w2_ref[...], preferred_element_type=jnp.float32).astype(o_ref.dtype)


# ---------------------------------------------------------------------------
# Pass 1: per (batch tile, k tile)  acc += x_k @ w1_k ; on last k: emit h (compute dtype)
#         and per-tile partial BN statistics from the f32 accumulator.
# ---------------------------------------------------------------------------
def _linear_stats_kernel(x_ref, w1_ref, h_ref, psum_ref, psq_ref, acc_ref):
    k = pl.program_id(1)

    @pl.when(k == 0)
    def _():
        acc_ref[...] = jnp.zeros_like(acc_ref)

    acc_ref[...] += jnp.dot(x_ref[...], w1_ref[...], preferred_element_type=jnp.float32)

    @pl.when(k == pl.num_programs(1) - 1)
    def _():
        h = acc_ref[...]
        h_ref[...] = h.astype(h_ref.dtype)
        psum_ref[...] = jnp.sum(h, axis=0, keepdims=True)
        psq_ref[...] = jnp.sum(h * h, axis=0, keepdims=True)


# ---------------------------------------------------------------------------
# Pass 2: per (batch tile, k tile)  acc += relu(h_k*scale_k + shift_k) @ w2_k ;
#         on last k: write the output tile.
# ---------------------------------------------------------------------------
def _bn_relu_linear_kernel(h_ref, scale_ref, shift_ref, w2_ref, o_ref, acc_ref):
    k = pl.program_id(1)

    @pl.when(k == 0)
    def _():
        acc_ref[...] = jnp.zeros_like(acc_ref)

    a = jnp.maximum(h_ref[...].astype(jnp.float32) * scale_ref[...] + shift_ref[...], 0.0)
    acc_ref[...] += jnp.dot(a.astype(w2_ref.dtype), w2_ref[...],
                            preferred_element_type=jnp.float32)

    @pl.when(k == pl.num_programs(1) - 1)
    def _():
        o_ref[...] = acc_ref[...].astype(o_ref.dtype)


# ---------------------------------------------------------------------------
# Tiling heuristics
# ---------------------------------------------------------------------------
def _pick_k_tile(k_dim, n_dim, itm, budget):
    """Largest K tile such that the (tk, n_dim) weight block (double-buffered, `itm`
    bytes/elem) stays within ~1/3 of the VMEM budget.  Either the full K (no tiling)
    or a multiple of 128 (lane-aligned; K is zero-padded up to a multiple of it)."""
    w_budget = budget // 3
    if 2 * itm * k_dim * n_dim <= w_budget:
        return k_dim
    n_k = pl.cdiv(2 * itm * k_dim * n_dim, w_budget)
    return max(128, _round_up(pl.cdiv(k_dim, n_k), 128))


def _pick_batch_tile(batch, tk1, tk2, hidden_p, d_out, itm, budget):
    """Largest batch tile (multiple of 8, <=1024) that fits the per-pass VMEM usage:
    pass 1 streams x/h tiles + resident w1 block + f32 accumulator; pass 2 streams
    h/out tiles + resident w2 block + f32 accumulator.  The passes never coexist."""
    f32 = 4
    fixed1 = 2 * itm * tk1 * hidden_p                       # w1 block, double-buffered
    row1 = 2 * itm * tk1 + 2 * itm * hidden_p + f32 * hidden_p
    fixed2 = 2 * itm * tk2 * d_out + 4 * f32 * tk2          # w2 block + scale/shift
    row2 = 2 * itm * tk2 + f32 * d_out + 2 * f32 * d_out
    tb = min(max((budget - fixed1) // row1, 8),
             max((budget - fixed2) // row2, 8),
             1024,
             _round_up(batch, 8))
    return max(8, (tb // 8) * 8)


# ---------------------------------------------------------------------------
# Public entry point
# ---------------------------------------------------------------------------
def projection_head(x, w1, b1, gamma, beta, w2, *, eps=1e-5, use_bf16=True,
                    block_b=None, block_k1=None, block_k2=None):
    """x:(B,D_in)  w1:(D_in,H)  b1/gamma/beta:(1,H)  w2:(H,D_out) -> (B,D_out).

    Matches ProjectionHead.forward with BatchNorm1d in training mode (batch stats,
    biased variance).  b1 is accepted for API parity but is an exact no-op under
    training-mode BN, so it is never read.  `use_bf16=True` runs the MXU in bf16 with
    f32 accumulation and stores the h intermediate in bf16 (BN stats stay exact)."""
    del b1  # analytically cancelled by the batch-mean subtraction inside BatchNorm

    gamma = gamma.reshape(1, -1)
    beta = beta.reshape(1, -1)

    batch, d_in = x.shape
    hidden = w1.shape[1]
    d_out = w2.shape[1]
    out_dtype = x.dtype
    compute_dtype = jnp.bfloat16 if use_bf16 else jnp.float32
    itm = 2 if use_bf16 else 4

    # ---- Small-problem fast path: one fused grid-less kernel, all f32 ----------------
    small_bytes = 4 * (max(batch, 8) * (d_in + 2 * hidden + d_out)
                       + d_in * hidden + hidden * d_out)
    if small_bytes <= 2 * 1024 * 1024 and block_b is None and block_k1 is None and block_k2 is None:
        kern = functools.partial(_fused_small_kernel, eps=float(eps), inv_n=1.0 / batch)
        return pl.pallas_call(
            kern,
            out_shape=jax.ShapeDtypeStruct((batch, d_out), out_dtype),
        )(x.astype(jnp.float32), w1.astype(jnp.float32),
          gamma.astype(jnp.float32), beta.astype(jnp.float32), w2.astype(jnp.float32))

    # ---- Two-pass pipelined path ------------------------------------------------------
    budget = _vmem_budget_bytes()

    tk1 = block_k1 if block_k1 is not None else _pick_k_tile(d_in, hidden, itm, budget)
    tk2 = block_k2 if block_k2 is not None else _pick_k_tile(hidden, d_out, itm, budget)
    d_in_p = _round_up(d_in, tk1)
    hidden_p = _round_up(hidden, tk2)

    # Zero-pad reduction dims (exact: zero columns/rows contribute nothing; padded hidden
    # channels get gamma=beta=0 -> a=0 and zero w2 rows -> zero contribution).
    if d_in_p != d_in:
        x = jnp.pad(x, ((0, 0), (0, d_in_p - d_in)))
        w1 = jnp.pad(w1, ((0, d_in_p - d_in), (0, 0)))
    if hidden_p != hidden:
        w1 = jnp.pad(w1, ((0, 0), (0, hidden_p - hidden)))
        gamma = jnp.pad(gamma, ((0, 0), (0, hidden_p - hidden)))
        beta = jnp.pad(beta, ((0, 0), (0, hidden_p - hidden)))
        w2 = jnp.pad(w2, ((0, hidden_p - hidden), (0, 0)))

    if block_b is not None:
        tile_b = block_b
        n_b = pl.cdiv(batch, tile_b)
    else:
        tile_b = _pick_batch_tile(batch, tk1, tk2, hidden_p, d_out, itm, budget)
        n_b = pl.cdiv(batch, tile_b)
        tile_b = _round_up(pl.cdiv(batch, n_b), 8)   # rebalance tiles, minimize padding
    b_pad = n_b * tile_b

    # Zero-pad batch (exact: zero rows contribute 0 to sum and sum-of-squares).
    if b_pad != batch:
        x = jnp.pad(x, ((0, b_pad - batch), (0, 0)))

    n_k1 = d_in_p // tk1
    n_k2 = hidden_p // tk2

    x_c = x.astype(compute_dtype)            # cast once, not per grid step
    w1_c = w1.astype(compute_dtype)
    w2_c = w2.astype(compute_dtype)

    cparams = pltpu.CompilerParams(
        dimension_semantics=("parallel", "arbitrary"),   # batch tiles independent, K is a reduction
        vmem_limit_bytes=int(budget),
    )

    # ---- Pass 1: h = x @ w1, per-tile partial sum / sumsq ----------------------------
    cost_a = pl.CostEstimate(
        flops=2 * b_pad * d_in_p * hidden_p + 3 * b_pad * hidden_p,
        transcendentals=0,
        bytes_accessed=itm * (b_pad * d_in_p + d_in_p * hidden_p + b_pad * hidden_p)
                       + 4 * 2 * n_b * hidden_p,
    )
    h, psum, psq = pl.pallas_call(
        _linear_stats_kernel,
        out_shape=(
            jax.ShapeDtypeStruct((b_pad, hidden_p), compute_dtype),
            jax.ShapeDtypeStruct((n_b, hidden_p), jnp.float32),
            jax.ShapeDtypeStruct((n_b, hidden_p), jnp.float32),
        ),
        grid=(n_b, n_k1),
        in_specs=[
            pl.BlockSpec((tile_b, tk1), lambda i, k: (i, k)),       # stream x tiles
            pl.BlockSpec((tk1, hidden_p), lambda i, k: (k, 0)),     # w1 K-blocks (resident if n_k1==1)
        ],
        out_specs=(
            pl.BlockSpec((tile_b, hidden_p), lambda i, k: (i, 0)),
            pl.BlockSpec((1, hidden_p), lambda i, k: (i, 0)),
            pl.BlockSpec((1, hidden_p), lambda i, k: (i, 0)),
        ),
        scratch_shapes=[pltpu.VMEM((tile_b, hidden_p), jnp.float32)],
        compiler_params=cparams,
        cost_estimate=cost_a,
    )(x_c, w1_c)

    # ---- Tiny (1, H) statistics math in plain XLA (exact training-mode BN) -----------
    inv_n = 1.0 / batch                               # TRUE batch, not the padded one
    mean = jnp.sum(psum, axis=0, keepdims=True) * inv_n
    var = jnp.sum(psq, axis=0, keepdims=True) * inv_n - mean * mean   # biased variance
    var = jnp.maximum(var, 0.0)                       # guard E[h^2]-mean^2 cancellation
    inv_std = jax.lax.rsqrt(var + eps)
    scale = gamma.astype(jnp.float32) * inv_std       # (1, Hp)
    shift = beta.astype(jnp.float32) - mean * scale   # (1, Hp)

    # ---- Pass 2: out = relu(h*scale + shift) @ w2 -------------------------------------
    cost_b = pl.CostEstimate(
        flops=2 * b_pad * hidden_p * d_out + 3 * b_pad * hidden_p,
        transcendentals=0,
        bytes_accessed=itm * (b_pad * hidden_p + hidden_p * d_out)
                       + 4 * (b_pad * d_out + 2 * hidden_p),
    )
    out = pl.pallas_call(
        _bn_relu_linear_kernel,
        out_shape=jax.ShapeDtypeStruct((b_pad, d_out), out_dtype),
        grid=(n_b, n_k2),
        in_specs=[
            pl.BlockSpec((tile_b, tk2), lambda i, k: (i, k)),       # stream h tiles
            pl.BlockSpec((1, tk2), lambda i, k: (0, k)),            # scale K-blocks
            pl.BlockSpec((1, tk2), lambda i, k: (0, k)),            # shift K-blocks
            pl.BlockSpec((tk2, d_out), lambda i, k: (k, 0)),        # w2 K-blocks
        ],
        out_specs=pl.BlockSpec((tile_b, d_out), lambda i, k: (i, 0)),
        scratch_shapes=[pltpu.VMEM((tile_b, d_out), jnp.float32)],
        compiler_params=cparams,
        cost_estimate=cost_b,
    )(h, scale, shift, w2_c)

    return out[:batch]
    # TODO(synk): BatchNorm1d running_mean/running_var buffer updates (training side
    # effect, would need b1 added back into the running mean) and N-tiling of hidden /
    # d_out for extremely wide layers are not implemented.


# ---------------------------------------------------------------------------
# Pure-JAX reference (f32)
# ---------------------------------------------------------------------------
def reference(x, w1, b1, gamma, beta, w2, eps=1e-5):
    h = x @ w1 + b1
    mean = jnp.mean(h, axis=0, keepdims=True)
    var = jnp.mean((h - mean) ** 2, axis=0, keepdims=True)
    h = (h - mean) / jnp.sqrt(var + eps) * gamma + beta
    a = jnp.maximum(h, 0.0)
    return a @ w2


if __name__ == "__main__":
    def make_inputs(key, b, d_in, h, d_out):
        kx, kw1, kb1, kw2 = jax.random.split(key, 4)
        x = jax.random.normal(kx, (b, d_in), dtype=jnp.float32)
        lim1 = 1.0 / float(d_in) ** 0.5
        w1 = jax.random.uniform(kw1, (d_in, h), jnp.float32, -lim1, lim1)
        b1 = jax.random.uniform(kb1, (1, h), jnp.float32, -lim1, lim1)
        gamma = jnp.ones((1, h), jnp.float32)      # fresh BatchNorm1d init
        beta = jnp.zeros((1, h), jnp.float32)
        lim2 = 1.0 / float(h) ** 0.5
        w2 = jax.random.uniform(kw2, (h, d_out), jnp.float32, -lim2, lim2)
        return x, w1, b1, gamma, beta, w2

    key = jax.random.PRNGKey(0)
    k1, k2, k3 = jax.random.split(key, 3)

    # 1) Shipped small shapes (batch=8, input=32, hidden=32, output=16) -> fused fast path.
    args = make_inputs(k1, 8, 32, 32, 16)
    out = jax.block_until_ready(projection_head(*args))
    ref = reference(*args)
    assert out.shape == (8, 16)
    assert jnp.allclose(out, ref, atol=1e-4, rtol=1e-4), "small fused path mismatch"

    # 2) Two-pass path with forced K-tiling + batch zero-padding, f32 (exact structural check).
    args = make_inputs(k2, 100, 384, 256, 128)
    out = jax.block_until_ready(
        projection_head(*args, use_bf16=False, block_b=64, block_k1=128, block_k2=128))
    ref = reference(*args)
    assert out.shape == (100, 128)
    assert jnp.allclose(out, ref, atol=2e-3, rtol=2e-3), "k-tiled f32 path mismatch"

    # 3) Two-pass path with default bf16 MXU operands + bf16 h intermediate, auto tiling.
    args = make_inputs(k3, 250, 512, 512, 256)
    out = jax.block_until_ready(projection_head(*args))
    ref = reference(*args)
    assert out.shape == (250, 256)
    assert jnp.allclose(out, ref, atol=3e-2, rtol=3e-2), "bf16 two-pass path mismatch"

    print("KERNEL_OK")
</pallas_src>

<mosaic_0001>
module attributes {stable_mosaic.version = 11 : i64} {
  func.func @_fused_small_kernel(%arg0: memref<8x32xf32, #tpu.memory_space<vmem>>, %arg1: memref<32x32xf32, #tpu.memory_space<vmem>>, %arg2: memref<1x32xf32, #tpu.memory_space<vmem>>, %arg3: memref<1x32xf32, #tpu.memory_space<vmem>>, %arg4: memref<32x16xf32, #tpu.memory_space<vmem>>, %arg5: memref<8x16xf32, #tpu.memory_space<vmem>>) attributes {dimension_semantics = [], scalar_prefetch = 0 : i64, scratch_operands = 0 : i64, tpu.core_type = #tpu.core_type<tc>} {
    %c0 = arith.constant 0 : index
    %c0_0 = arith.constant 0 : index
    %0 = vector.load %arg0[%c0, %c0_0] : memref<8x32xf32, #tpu.memory_space<vmem>>, vector<8x32xf32>
    %c0_1 = arith.constant 0 : index
    %c0_2 = arith.constant 0 : index
    %1 = vector.load %arg1[%c0_1, %c0_2] : memref<32x32xf32, #tpu.memory_space<vmem>>, vector<32x32xf32>
    %cst = arith.constant dense<0.000000e+00> : vector<8x32xf32>
    %2 = tpu.matmul %0, %1, %cst {dimension_numbers = #tpu.dot_dimension_numbers<[1], [0], [0], [1], [0, 0, 1, 1], [], []>} : vector<8x32xf32>, vector<32x32xf32>, vector<8x32xf32> -> vector<8x32xf32>
    %cst_3 = arith.constant dense<0.000000e+00> : vector<32xf32>
    %3 = vector.multi_reduction <add>, %2, %cst_3 [0] : vector<8x32xf32> to vector<32xf32>
    %4 = vector.shape_cast %3 : vector<32xf32> to vector<1x32xf32>
    %cst_4 = arith.constant 1.250000e-01 : f32
    %5 = vector.broadcast %cst_4 : f32 to vector<1x32xf32>
    %6 = arith.mulf %4, %5 : vector<1x32xf32>
    %7 = arith.mulf %2, %2 : vector<8x32xf32>
    %cst_5 = arith.constant dense<0.000000e+00> : vector<32xf32>
    %8 = vector.multi_reduction <add>, %7, %cst_5 [0] : vector<8x32xf32> to vector<32xf32>
    %9 = vector.shape_cast %8 : vector<32xf32> to vector<1x32xf32>
    %cst_6 = arith.constant 1.250000e-01 : f32
    %10 = vector.broadcast %cst_6 : f32 to vector<1x32xf32>
    %11 = arith.mulf %9, %10 : vector<1x32xf32>
    %12 = arith.mulf %6, %6 : vector<1x32xf32>
    %13 = arith.subf %11, %12 : vector<1x32xf32>
    %cst_7 = arith.constant 0.000000e+00 : f32
    %14 = vector.broadcast %cst_7 : f32 to vector<1x32xf32>
    %15 = arith.maximumf %13, %14 : vector<1x32xf32>
    %c0_8 = arith.constant 0 : index
    %c0_9 = arith.constant 0 : index
    %16 = vector.load %arg2[%c0_8, %c0_9] : memref<1x32xf32, #tpu.memory_space<vmem>>, vector<1x32xf32>
    %cst_10 = arith.constant 9.99999974E-6 : f32
    %17 = vector.broadcast %cst_10 : f32 to vector<1x32xf32>
    %18 = arith.addf %15, %17 : vector<1x32xf32>
    %19 = math.rsqrt %18 : vector<1x32xf32>
    %20 = arith.mulf %16, %19 : vector<1x32xf32>
    %c0_11 = arith.constant 0 : index
    %c0_12 = arith.constant 0 : index
    %21 = vector.load %arg3[%c0_11, %c0_12] : memref<1x32xf32, #tpu.memory_space<vmem>>, vector<1x32xf32>
    %22 = arith.mulf %6, %20 : vector<1x32xf32>
    %23 = arith.subf %21, %22 : vector<1x32xf32>
    %24 = vector.broadcast %20 : vector<1x32xf32> to vector<8x32xf32>
    %25 = arith.mulf %2, %24 : vector<8x32xf32>
    %26 = vector.broadcast %23 : vector<1x32xf32> to vector<8x32xf32>
    %27 = arith.addf %25, %26 : vector<8x32xf32>
    %cst_13 = arith.constant 0.000000e+00 : f32
    %28 = vector.broadcast %cst_13 : f32 to vector<8x32xf32>
    %29 = arith.maximumf %27, %28 : vector<8x32xf32>
    %c0_14 = arith.constant 0 : index
    %c0_15 = arith.constant 0 : index
    %30 = vector.load %arg4[%c0_14, %c0_15] : memref<32x16xf32, #tpu.memory_space<vmem>>, vector<32x16xf32>
    %cst_16 = arith.constant dense<0.000000e+00> : vector<8x16xf32>
    %31 = tpu.matmul %29, %30, %cst_16 {dimension_numbers = #tpu.dot_dimension_numbers<[1], [0], [0], [1], [0, 0, 1, 1], [], []>} : vector<8x32xf32>, vector<32x16xf32>, vector<8x16xf32> -> vector<8x16xf32>
    %c0_17 = arith.constant 0 : index
    %c0_18 = arith.constant 0 : index
    %32 = vector.load %arg5[%c0_17, %c0_18] : memref<8x16xf32, #tpu.memory_space<vmem>>, vector<8x16xf32>
    tpu.vector_store %arg5[%c0_17, %c0_18], %31 {strides = array<i32>} : memref<8x16xf32, #tpu.memory_space<vmem>>, vector<8x16xf32>,
    return
  }
}

</mosaic_0001>

<bundles_post_ra>
// kernel: tpu_custom_call.1
= control target key start
LH: loop header
LB: loop body
LE: loop exit
PB: predicated region body
PF: predicated region fallthrough
CT: control target
= control target key end

     0   :  { %v311_v3 = vmov 0.0|0.0   ;;  %vm312_vm0 = vmmov 0   ;;  %v313_v6 = vmov 0.0   ;;  %s394_s0 = inlined_call_operand.vmem [shape: f32[8,32], index: 0, kind: input, shape index: {}]   ;;  %s395_s1 = inlined_call_operand.vmem [shape: f32[32,32], index: 1, kind: input, shape index: {}]   ;;  %s396_s2 = inlined_call_operand.vmem [shape: f32[1,32], index: 2, kind: input, shape index: {}]   ;;  %s397_s3 = inlined_call_operand.vmem [shape: f32[1,32], index: 3, kind: input, shape index: {}]   ;;  %s398_s4 = inlined_call_operand.vmem [shape: f32[32,16], index: 4, kind: input, shape index: {}]   ;;  %s399_s5 = inlined_call_operand.hbm [shape: f32[8,16], index: 5, kind: output, shape index: {}]  }
   0x1   :  { %v22_v0 = vld [vmem:[%s395_s1] sm:$0xff]  ;;  %v23_v1 = vld [vmem:[%s395_s1 + $0x8] sm:$0xff]  ;;  %v24_v2 = vld [vmem:[%s395_s1 + $0x10] sm:$0xff]  ;;  %269 = vmatprep.subr.bf16.mxu0 %v311_v3  ;;  %255 = vmatprep.mubr.msk.f32.mxu0 %vm312_vm0, %v313_v6 }
   0x2   :  { %v270_v4 = vpack.c.bf16 %v23_v1, %v22_v0  ;;  %v25_v5 = vld [vmem:[%s395_s1 + $0x18] sm:$0xff] }
   0x3   :  { %10 = vsyncpa [#allocation3], 0  ;;  %275 = vmatprep.subr.bf16.mxu1 %v311_v3  ;;  %266 = vmatprep.mubr.msk.f32.mxu1 %vm312_vm0, %v313_v6  ;;  %v273_v7 = vpack.c.bf16 %v25_v5, %v24_v2  ;;  %v21_v8 = vld [vmem:[%s394_s0] sm:$0xff]  ;;  %vm26_vm1 = vcmask 261120   ;;  %v143_v10 = vld [vmem:[%s398_s4 + $0x8] sm:$0xff]  ;;  %v128_v38 = vlaneseq  ;;  %s314_s12 = smov [#allocation2]  }
   0x4   :  { %271 = vmatpush3.bf16.msra.mxu0 %v270_v4  ;;  %v142_v9 = vld [vmem:[%s398_s4] sm:$0xff]  ;;  %v144_v12 = vld [vmem:[%s398_s4 + $0x10] sm:$0xff]  ;;  %v145_v13 = vld [vmem:[%s398_s4 + $0x18] sm:$0xff]  ;;  %s227_s13 = sshll.u32 %s314_s12, 4  ;;  %vm219_vm2 = vcmask 130048   ;;  %s228_s13 = int_to_ptr.vmem [resolvable:$true] %s227_s13 }
   0x5   :  { %272 = vmatprep.subr.bf16.mxu0 %v311_v3  ;;  %v276_v11 = vpack.c.bf16 %v143_v10, %v142_v9  ;;  %v279_v14 = vpack.c.bf16 %v145_v13, %v144_v12  ;;  %v129_v39 = vshrl.u32 %v128_v38, 7  ;;  %v120_v40 = vld [vmem:[%s396_s2] sm:$0x1]  ;;  %s287_s2 = scalar_lea.vmem %s228_s13, 128  ;;  %p292_p1 = scmp.lt.s32.totalorder %s228_s13, %s228_s13 }
   0x6   :  { %v124_v44 = vld [vmem:[%s397_s3] sm:$0x1]  ;;  %p288_p0 = scmp.ne.s32.totalorder %s228_s13, %s287_s2  ;;  %p293_p2 = scmp.lt.s32.totalorder %s287_s2, %s287_s2 }
   0x7   :  { %277 = vmatpush3.bf16.msra.mxu1 %v276_v11  ;;  %v130_v41 = vsub.s32 0, %v129_v39 }
   0x8   :  { %274 = vmatpush3.bf16.msra.mxu0 %v273_v7  ;;  %278 = vmatprep.subr.bf16.mxu1 %v311_v3  ;;  %p294_p3 = por %p293_p2, %p292_p1 }
   0xa   :  { %p295_p4 = pnand %p294_p3, %p288_p0 }
   0xb   :  { %256 = vmatmul.mubr.msk.f32.vlgmr.msra.gmra.mrb[0].mxu0 %vm26_vm1, %v21_v8  ;;  %280 = vmatpush3.bf16.msra.mxu1 %v279_v14 }
  0xde   :  { %v96_v15 = vpop.f32.mrb[0].mxu0 }
  0xdf   :  { %v100_v16 = vsel %vm26_vm1, %v96_v15, 0.0  ;;  %v108_v17 = vmul.f32 %v96_v15, %v96_v15  ;;  %v257_v18 = vpop.f32.mrb[1].mxu0 }
  0xe0   :  { %v101_v19 = vrot.slane %v100_v16, 4 }
  0xe1   :  { %v109_v20 = vsel %vm26_vm1, %v108_v17, 0.0 }
  0xe2   :  { %v102_v21 = vadd.f32 %v101_v19, %v100_v16  ;;  %v110_v22 = vrot.slane %v109_v20, 4 }
  0xe4   :  { %v103_v23 = vrot.slane %v102_v21, 2  ;;  %v111_v24 = vadd.f32 %v110_v22, %v109_v20 }
  0xe6   :  { %v104_v25 = vadd.f32 %v103_v23, %v102_v21  ;;  %v112_v26 = vrot.slane %v111_v24, 2 }
  0xe8   :  { %v105_v27 = vrot.slane %v104_v25, 1  ;;  %v113_v28 = vadd.f32 %v112_v26, %v111_v24 }
  0xea   :  { %v106_v29 = vadd.f32 %v105_v27, %v104_v25  ;;  %v114_v30 = vrot.slane %v113_v28, 1 }
  0xec   :  { %v107_v31 = vmul.f32 0.125, %v106_v29  ;;  %v115_v32 = vadd.f32 %v114_v30, %v113_v28 }
  0xee   :  { %v116_v33 = vmul.f32 0.125, %v115_v32  ;;  %v117_v34 = vmul.f32 %v107_v31, %v107_v31 }
  0xf0   :  { %v118_v35 = vsub.f32 %v116_v33, %v117_v34 }
  0xf2   :  { %v119_v36 = vmax.f32 %v118_v35, 0.0 }
  0xf4   :  { %v121_v37 = vadd.f32 1e-05, %v119_v36 }
  0xf6   :  { %285 = vrsqrt.f32 %v121_v37 }
 0x100   :  { %v286_v42 = vpop.eup %285 }
 0x101   :  { %v123_v43 = vmul.f32 %v286_v42, %v120_v40 }
 0x103   :  { %v125_v45 = vmul.f32 %v123_v43, %v107_v31  ;;  %v131_v46 = vrot.slane %v123_v43, %v130_v41 }
 0x105   :  { %v126_v47 = vsub.f32 %v124_v44, %v125_v45  ;;  %v133_v48 = vmul.f32 %v131_v46, %v96_v15 }
 0x107   :  { %v138_v49 = vrot.slane %v126_v47, %v130_v41 }
 0x109   :  { %v140_v50 = vadd.f32 %v138_v49, %v133_v48 }
 0x10b   :  { %v141_v51 = vmax.f32 %v140_v50, 0.0 }
 0x10d   :  { %267 = vmatmul.mubr.msk.f32.vlgmr.msra.gmra.mrb[0].mxu1 %vm26_vm1, %v141_v51 }
 0x1e0   :  { %v215_v52 = vpop.f32.mrb[0].mxu1 }
 0x1e1   :  { %220 = vst.msk [vmem:[#allocation2] sm:$0xff] %vm219_vm2, %v215_v52  ;;  %v268_v53 = vpop.f32.mrb[1].mxu1 }
 0x1e2   :  { %298 = shalt.err (!%p295_p4)
}
 0x1e3   :  { %s299_s15 = scalar_lea.hbm %s399_s5, 128 }
 0x1e4   :  { %p300_p5 = scmp.ne.s32.totalorder %s399_s5, %s299_s15  ;;  %p303_p6 = scmp.lt.u32.totalorder %s299_s15, %s399_s5 }
 0x1e6   :  { %p305_p7 = pnand %p303_p6, %p300_p5 }
 0x1e8   :  { %308 = shalt.err (!%p305_p7)
}
 0x1e9   :  { %230 = dma.vmem_to_hbm [thread:$0]  %s228_s13, 128, %s399_s5, [#allocation3]  }
 0x1ea   :  { %309 = dma.done.wait [#allocation3], 128  }
 0x1eb   :  { %310 = vsyncadd [#allocation3], 4294967168 }
 0x1ec   :  { %234 = vsyncpa [#allocation3], 1 }

</bundles_post_ra>
